<compile_context>
chip_gen: v6e
topology: v6e:2x2x1
jax: 0.10.0
libtpu: 0.0.40
codegen_flags: <defaults>
</compile_context>

<pallas_src>
import functools

import jax
import jax.numpy as jnp
from jax.experimental import pallas as pl
from jax.experimental.pallas import tpu as pltpu

VMEM_SPACE = pltpu.MemorySpace.VMEM

# Tile targets (chosen to double-buffer comfortably inside v7x's 64 MiB VMEM;
# v6e/v5e with 128 MiB could go larger). Blocks clamp to the full dim when the
# array is smaller, which keeps the (8,128) block constraints satisfied at toy sizes.
TM, TN, TK = 256, 512, 512
TQ, TKV = 128, 128
VMEM_LIMIT = 48 * 1024 * 1024


def _tile(dim, target):
    return dim if dim <= target else target


def _pad2d(x, rows, cols):
    pr, pc = rows - x.shape[0], cols - x.shape[1]
    if pr or pc:
        x = jnp.pad(x, ((0, pr), (0, pc)))
    return x


# ----------------------------------------------------------------------------
# Tiled dense (+ bias + optional activation)
# ----------------------------------------------------------------------------
def _dense_kernel(x_ref, w_ref, b_ref, o_ref, acc_ref, *, act):
    k = pl.program_id(2)

    @pl.when(k == 0)
    def _():
        acc_ref[...] = jnp.zeros_like(acc_ref)

    acc_ref[...] += jnp.dot(x_ref[...], w_ref[...],
                            preferred_element_type=jnp.float32)

    @pl.when(k == pl.num_programs(2) - 1)
    def _():
        y = acc_ref[...] + b_ref[...]          # f32 epilogue math (VPU/EUP in f32)
        if act == "relu":
            y = jnp.maximum(y, 0.0)
        elif act == "tanh":
            y = jnp.tanh(y)
        elif act == "gelu":
            c = jnp.float32(0.7978845608028654)  # sqrt(2/pi), tanh-approx GELU
            y = 0.5 * y * (1.0 + jnp.tanh(c * (y + 0.044715 * y * y * y)))
        o_ref[...] = y.astype(o_ref.dtype)


def dense(x, w, b, act="none", out_dtype=jnp.bfloat16):
    M, K = x.shape
    N = w.shape[1]
    tm, tk, tn = _tile(M, TM), _tile(K, TK), _tile(N, TN)
    Mp, Kp, Np = pl.cdiv(M, tm) * tm, pl.cdiv(K, tk) * tk, pl.cdiv(N, tn) * tn

    xp = _pad2d(x.astype(jnp.bfloat16), Mp, Kp)
    wp = _pad2d(w.astype(jnp.bfloat16), Kp, Np)
    bp = _pad2d(b.reshape(1, N).astype(jnp.float32), 1, Np)

    out = pl.pallas_call(
        functools.partial(_dense_kernel, act=act),
        out_shape=jax.ShapeDtypeStruct((Mp, Np), out_dtype),
        grid_spec=pltpu.PrefetchScalarGridSpec(
            num_scalar_prefetch=0,
            grid=(Mp // tm, Np // tn, Kp // tk),
            in_specs=[
                pl.BlockSpec((tm, tk), lambda i, j, k: (i, k)),
                pl.BlockSpec((tk, tn), lambda i, j, k: (k, j)),
                pl.BlockSpec((1, tn), lambda i, j, k: (0, j)),
            ],
            out_specs=pl.BlockSpec((tm, tn), lambda i, j, k: (i, j)),
            scratch_shapes=[pltpu.VMEM((tm, tn), jnp.float32)],
        ),
        compiler_params=pltpu.CompilerParams(
            dimension_semantics=("parallel", "parallel", "arbitrary"),
            vmem_limit_bytes=VMEM_LIMIT),
        cost_estimate=pl.CostEstimate(
            flops=2 * Mp * Np * Kp,
            transcendentals=Mp * Np if act in ("tanh", "gelu") else 0,
            bytes_accessed=2 * (Mp * Kp + Kp * Np + Mp * Np)),
    )(xp, wp, bp)
    if (Mp, Np) != (M, N):
        out = out[:M, :N]
    return out


# ----------------------------------------------------------------------------
# Dense + bias + residual add + LayerNorm fused in the epilogue (full-N output block)
# ----------------------------------------------------------------------------
def _dense_res_ln_kernel(x_ref, w_ref, b_ref, r_ref, g_ref, bt_ref, o_ref,
                         acc_ref, *, eps):
    k = pl.program_id(1)

    @pl.when(k == 0)
    def _():
        acc_ref[...] = jnp.zeros_like(acc_ref)

    acc_ref[...] += jnp.dot(x_ref[...], w_ref[...],
                            preferred_element_type=jnp.float32)

    @pl.when(k == pl.num_programs(1) - 1)
    def _():
        y = acc_ref[...] + b_ref[...] + r_ref[...].astype(jnp.float32)
        mu = jnp.mean(y, axis=-1, keepdims=True)
        var = jnp.mean(jnp.square(y - mu), axis=-1, keepdims=True)
        y = (y - mu) * jax.lax.rsqrt(var + eps) * g_ref[...] + bt_ref[...]
        o_ref[...] = y.astype(o_ref.dtype)


def dense_residual_layernorm(x, w, b, res, gamma, beta, eps=1e-12,
                             out_dtype=jnp.bfloat16):
    M, K = x.shape
    N = w.shape[1]
    tm, tk = _tile(M, TM), _tile(K, TK)
    Mp, Kp = pl.cdiv(M, tm) * tm, pl.cdiv(K, tk) * tk

    xp = _pad2d(x.astype(jnp.bfloat16), Mp, Kp)
    wp = _pad2d(w.astype(jnp.bfloat16), Kp, N)
    bp = b.reshape(1, N).astype(jnp.float32)
    rp = _pad2d(res.astype(jnp.bfloat16), Mp, N)
    gp = gamma.reshape(1, N).astype(jnp.float32)
    btp = beta.reshape(1, N).astype(jnp.float32)

    out = pl.pallas_call(
        functools.partial(_dense_res_ln_kernel, eps=eps),
        out_shape=jax.ShapeDtypeStruct((Mp, N), out_dtype),
        grid_spec=pltpu.PrefetchScalarGridSpec(
            num_scalar_prefetch=0,
            grid=(Mp // tm, Kp // tk),
            in_specs=[
                pl.BlockSpec((tm, tk), lambda i, k: (i, k)),
                pl.BlockSpec((tk, N), lambda i, k: (k, 0)),
                pl.BlockSpec((1, N), lambda i, k: (0, 0)),
                pl.BlockSpec((tm, N), lambda i, k: (i, 0)),
                pl.BlockSpec((1, N), lambda i, k: (0, 0)),
                pl.BlockSpec((1, N), lambda i, k: (0, 0)),
            ],
            out_specs=pl.BlockSpec((tm, N), lambda i, k: (i, 0)),
            scratch_shapes=[pltpu.VMEM((tm, N), jnp.float32)],
        ),
        compiler_params=pltpu.CompilerParams(
            dimension_semantics=("parallel", "arbitrary"),
            vmem_limit_bytes=VMEM_LIMIT),
        cost_estimate=pl.CostEstimate(
            flops=2 * Mp * N * Kp, transcendentals=Mp,
            bytes_accessed=2 * (Mp * Kp + Kp * N + 2 * Mp * N)),
    )(xp, wp, bp, rp, gp, btp)
    return out[:M] if Mp != M else out


# ----------------------------------------------------------------------------
# Standalone LayerNorm (embeddings)
# ----------------------------------------------------------------------------
def _ln_kernel(x_ref, g_ref, b_ref, o_ref, *, eps):
    x = x_ref[...].astype(jnp.float32)
    mu = jnp.mean(x, axis=-1, keepdims=True)
    var = jnp.mean(jnp.square(x - mu), axis=-1, keepdims=True)
    y = (x - mu) * jax.lax.rsqrt(var + eps) * g_ref[...] + b_ref[...]
    o_ref[...] = y.astype(o_ref.dtype)


def layernorm(x, g, b, eps=1e-12, out_dtype=jnp.bfloat16):
    M, D = x.shape
    tm = _tile(M, TM)
    Mp = pl.cdiv(M, tm) * tm
    xp = x if Mp == M else jnp.pad(x, ((0, Mp - M), (0, 0)))
    out = pl.pallas_call(
        functools.partial(_ln_kernel, eps=eps),
        out_shape=jax.ShapeDtypeStruct((Mp, D), out_dtype),
        grid_spec=pltpu.PrefetchScalarGridSpec(
            num_scalar_prefetch=0,
            grid=(Mp // tm,),
            in_specs=[
                pl.BlockSpec((tm, D), lambda i: (i, 0)),
                pl.BlockSpec((1, D), lambda i: (0, 0)),
                pl.BlockSpec((1, D), lambda i: (0, 0)),
            ],
            out_specs=pl.BlockSpec((tm, D), lambda i: (i, 0)),
        ),
        compiler_params=pltpu.CompilerParams(
            dimension_semantics=("parallel",), vmem_limit_bytes=VMEM_LIMIT),
    )(xp, g.reshape(1, D).astype(jnp.float32), b.reshape(1, D).astype(jnp.float32))
    return out[:M] if Mp != M else out


# ----------------------------------------------------------------------------
# Flash-style attention (online softmax, kv-tiled, never materializes full SxS)
# q is pre-scaled by 1/sqrt(head_dim) via the fused QKV weight.
# ----------------------------------------------------------------------------
def _flash_attn_kernel(q_ref, k_ref, v_ref, o_ref, m_ref, l_ref, acc_ref):
    ki = pl.program_id(2)

    @pl.when(ki == 0)
    def _():
        m_ref[...] = jnp.full(m_ref.shape, -jnp.inf, jnp.float32)
        l_ref[...] = jnp.zeros(l_ref.shape, jnp.float32)
        acc_ref[...] = jnp.zeros(acc_ref.shape, jnp.float32)

    s = jnp.einsum("bqd,bkd->bqk", q_ref[...], k_ref[...],
                   preferred_element_type=jnp.float32)
    m_prev = m_ref[...]
    m_new = jnp.maximum(m_prev, jnp.max(s, axis=-1, keepdims=True))
    alpha = jnp.exp(m_prev - m_new)
    p = jnp.exp(s - m_new)
    l_ref[...] = alpha * l_ref[...] + jnp.sum(p, axis=-1, keepdims=True)
    acc_ref[...] = alpha * acc_ref[...] + jnp.einsum(
        "bqk,bkd->bqd", p.astype(v_ref.dtype), v_ref[...],
        preferred_element_type=jnp.float32)
    m_ref[...] = m_new

    @pl.when(ki == pl.num_programs(2) - 1)
    def _():
        o_ref[...] = (acc_ref[...] * pl.reciprocal(l_ref[...], approx=True)
                      ).astype(o_ref.dtype)


def flash_attention(q, k, v):
    BH, S, dh = q.shape
    tq, tkv = _tile(S, TQ), _tile(S, TKV)
    # TODO(synk): pad + mask kv tiles for S not divisible by the tile (BERT S=512 divides).
    assert S % tq == 0 and S % tkv == 0
    return pl.pallas_call(
        _flash_attn_kernel,
        out_shape=jax.ShapeDtypeStruct((BH, S, dh), q.dtype),
        grid_spec=pltpu.PrefetchScalarGridSpec(
            num_scalar_prefetch=0,
            grid=(BH, S // tq, S // tkv),
            in_specs=[
                pl.BlockSpec((1, tq, dh), lambda b, qi, ki: (b, qi, 0)),
                pl.BlockSpec((1, tkv, dh), lambda b, qi, ki: (b, ki, 0)),
                pl.BlockSpec((1, tkv, dh), lambda b, qi, ki: (b, ki, 0)),
            ],
            out_specs=pl.BlockSpec((1, tq, dh), lambda b, qi, ki: (b, qi, 0)),
            scratch_shapes=[
                pltpu.VMEM((1, tq, 1), jnp.float32),
                pltpu.VMEM((1, tq, 1), jnp.float32),
                pltpu.VMEM((1, tq, dh), jnp.float32),
            ],
        ),
        compiler_params=pltpu.CompilerParams(
            dimension_semantics=("parallel", "parallel", "arbitrary"),
            vmem_limit_bytes=VMEM_LIMIT),
        cost_estimate=pl.CostEstimate(
            flops=4 * BH * S * S * dh,
            transcendentals=BH * S * S,
            bytes_accessed=8 * BH * S * dh),
    )(q, k, v)


# ----------------------------------------------------------------------------
# MLP classification head (fused; classifier output padded to 128 lanes)
# ----------------------------------------------------------------------------
def _mlp_head_kernel(x_ref, w1_ref, b1_ref, w2_ref, b2_ref, w3_ref, b3_ref, o_ref):
    h = jnp.dot(x_ref[...], w1_ref[...], preferred_element_type=jnp.float32) + b1_ref[...]
    h = jnp.maximum(h, 0.0).astype(jnp.bfloat16)
    h = jnp.dot(h, w2_ref[...], preferred_element_type=jnp.float32) + b2_ref[...]
    h = jnp.maximum(h, 0.0).astype(jnp.bfloat16)
    y = jnp.dot(h, w3_ref[...], preferred_element_type=jnp.float32) + b3_ref[...]
    o_ref[...] = y.astype(o_ref.dtype)


def mlp_head(x, hp, num_class):
    # TODO(synk): specialized to mlp_layers == 2 (3 Linear layers), as in the reference config.
    M = x.shape[0]
    ncp = ((num_class + 127) // 128) * 128          # lane-dense output, slice afterwards
    w3p = jnp.pad(hp["w3"], ((0, 0), (0, ncp - num_class)))
    b3p = jnp.pad(hp["b3"], (0, ncp - num_class))
    out = pl.pallas_call(
        _mlp_head_kernel,
        out_shape=jax.ShapeDtypeStruct((M, ncp), jnp.float32),
        in_specs=[pl.BlockSpec(memory_space=VMEM_SPACE)] * 7,
        out_specs=pl.BlockSpec(memory_space=VMEM_SPACE),
        compiler_params=pltpu.CompilerParams(vmem_limit_bytes=VMEM_LIMIT),
    )(
        x.astype(jnp.bfloat16),
        hp["w1"], hp["b1"].reshape(1, -1),
        hp["w2"], hp["b2"].reshape(1, -1),
        w3p, b3p.reshape(1, -1),
    )
    return out[:, :num_class]


# ----------------------------------------------------------------------------
# Parameter construction (deterministic, synthetic)
# ----------------------------------------------------------------------------
def init_params(key, cfg):
    keys = iter(jax.random.split(key, 256))

    def nrm(shape):
        return jax.random.normal(next(keys), shape, jnp.float32) * 0.02

    D, F, H = cfg["bert_dim"], cfg["ffn_dim"], cfg["num_heads"]
    dh = D // H
    scale = 1.0 / float(dh) ** 0.5

    params = {
        "cfg": cfg,
        "word_emb": nrm((cfg["vocab"], D)),
        "pos_emb": nrm((cfg["max_pos"], D)),
        "type_emb": nrm((2, D)),
        "emb_ln_g": jnp.ones((D,), jnp.float32),
        "emb_ln_b": jnp.zeros((D,), jnp.float32),
        "layers": [],
        "pooler_w": nrm((D, D)).astype(jnp.bfloat16),
        "pooler_b": jnp.zeros((D,), jnp.float32),
        "head": {
            "w1": nrm((D, cfg["hidden_dim"])).astype(jnp.bfloat16),
            "b1": jnp.zeros((cfg["hidden_dim"],), jnp.float32),
            "w2": nrm((cfg["hidden_dim"], cfg["hidden_dim"])).astype(jnp.bfloat16),
            "b2": jnp.zeros((cfg["hidden_dim"],), jnp.float32),
            "w3": nrm((cfg["hidden_dim"], cfg["num_class"])).astype(jnp.bfloat16),
            "b3": jnp.zeros((cfg["num_class"],), jnp.float32),
        },
    }
    for _ in range(cfg["num_layers"]):
        wq, wk, wv = nrm((D, D)), nrm((D, D)), nrm((D, D))
        # Fused QKV projection with 1/sqrt(dh) folded into the Q block (zero runtime cost).
        wqkv = jnp.concatenate([wq * scale, wk, wv], axis=1).astype(jnp.bfloat16)
        bqkv = jnp.zeros((3 * D,), jnp.float32)
        params["layers"].append({
            "wqkv": wqkv, "bqkv": bqkv,
            "wo": nrm((D, D)).astype(jnp.bfloat16), "bo": jnp.zeros((D,), jnp.float32),
            "ln1_g": jnp.ones((D,), jnp.float32), "ln1_b": jnp.zeros((D,), jnp.float32),
            "w_ff1": nrm((D, F)).astype(jnp.bfloat16), "b_ff1": jnp.zeros((F,), jnp.float32),
            "w_ff2": nrm((F, D)).astype(jnp.bfloat16), "b_ff2": jnp.zeros((D,), jnp.float32),
            "ln2_g": jnp.ones((D,), jnp.float32), "ln2_b": jnp.zeros((D,), jnp.float32),
        })
    return params


# ----------------------------------------------------------------------------
# Forward (mirrors BertERC.forward; eval mode -> dropout is identity)
# ----------------------------------------------------------------------------
def bert_erc_forward(params, content_ids, token_types, utterance_len, seq_len):
    # The PyTorch forward only feeds content_ids to BERT; the other args are unused.
    del token_types, utterance_len, seq_len
    cfg = params["cfg"]
    B, S = content_ids.shape
    D, H = cfg["bert_dim"], cfg["num_heads"]
    dh = D // H

    # Embeddings (gather is glue in plain JAX), then Pallas LayerNorm -> bf16 activations.
    emb = (params["word_emb"][content_ids]
           + params["pos_emb"][None, :S, :]
           + params["type_emb"][0][None, None, :])
    h = layernorm(emb.reshape(B * S, D), params["emb_ln_g"], params["emb_ln_b"])

    def split_heads(x):
        return x.reshape(B, S, H, dh).transpose(0, 2, 1, 3).reshape(B * H, S, dh)

    for lp in params["layers"]:
        # Fused QKV projection (Q already scaled by 1/sqrt(dh) inside wqkv).
        qkv = dense(h, lp["wqkv"], lp["bqkv"])               # (B*S, 3D) bf16
        q, k, v = qkv[:, :D], qkv[:, D:2 * D], qkv[:, 2 * D:]
        # TODO(synk): head split/merge left as XLA reshape/transpose glue; a fully fused
        # per-layer emit_pipeline kernel would keep it VMEM-resident.
        ctx = flash_attention(split_heads(q), split_heads(k), split_heads(v))
        ctx = ctx.reshape(B, H, S, dh).transpose(0, 2, 1, 3).reshape(B * S, D)
        # Attention output projection fused with residual add + LayerNorm.
        h = dense_residual_layernorm(ctx, lp["wo"], lp["bo"], h,
                                     lp["ln1_g"], lp["ln1_b"])
        ff = dense(h, lp["w_ff1"], lp["b_ff1"], act="gelu")
        # FFN second matmul fused with residual add + LayerNorm.
        h = dense_residual_layernorm(ff, lp["w_ff2"], lp["b_ff2"], h,
                                     lp["ln2_g"], lp["ln2_b"])

    # BERT pooled output: Linear + tanh on the [CLS] token == self.bert(content_ids)[1]
    cls = h.reshape(B, S, D)[:, 0, :]
    pooled = dense(cls, params["pooler_w"], params["pooler_b"], act="tanh")

    # self.dropout(...) -> identity in eval mode.
    logits = mlp_head(pooled, params["head"], cfg["num_class"])  # out_mlp
    return logits


if __name__ == "__main__":
    cfg = dict(
        vocab=64, max_pos=16, bert_dim=32, num_heads=4, ffn_dim=64, num_layers=2,
        hidden_dim=32, mlp_layers=2, num_class=6,
    )
    B, S = 2, 8

    root = jax.random.PRNGKey(0)
    k_param, k_ids = jax.random.split(root)
    params = init_params(k_param, cfg)

    content_ids = jax.random.randint(k_ids, (B, S), 0, cfg["vocab"], dtype=jnp.int32)
    token_types = jnp.zeros((B, S), jnp.int32)
    utterance_len = jnp.full((B,), S, jnp.int32)
    seq_len = jnp.full((B,), S, jnp.int32)

    logits = bert_erc_forward(params, content_ids, token_types, utterance_len, seq_len)
    jax.block_until_ready(logits)
    assert logits.shape == (B, cfg["num_class"])
    print("KERNEL_OK")
</pallas_src>

<mosaic_0001>
module attributes {stable_mosaic.version = 11 : i64} {
  func.func @_ln_kernel(%arg0: i32, %arg1: memref<16x32xf32, #tpu.memory_space<vmem>>, %arg2: memref<1x32xf32, #tpu.memory_space<vmem>>, %arg3: memref<1x32xf32, #tpu.memory_space<vmem>>, %arg4: memref<16x32xbf16, #tpu.memory_space<vmem>>) attributes {dimension_semantics = [#tpu.dimension_semantics<parallel>], iteration_bounds = array<i64: 1>, scalar_prefetch = 0 : i64, scratch_operands = 0 : i64, tpu.core_type = #tpu.core_type<tc>, window_params = [{transform_indices = @transform_0, window_bounds = array<i64: 16, 32>}, {pipeline_mode = #tpu.pipeline_mode<synchronous>, transform_indices = @transform_1, window_bounds = array<i64: 1, 32>}, {pipeline_mode = #tpu.pipeline_mode<synchronous>, transform_indices = @transform_2, window_bounds = array<i64: 1, 32>}, {transform_indices = @transform_3, window_bounds = array<i64: 16, 32>}]} {
    %c0 = arith.constant 0 : index
    %c0_0 = arith.constant 0 : index
    %0 = vector.load %arg1[%c0, %c0_0] : memref<16x32xf32, #tpu.memory_space<vmem>>, vector<16x32xf32>
    %cst = arith.constant dense<0.000000e+00> : vector<16xf32>
    %1 = vector.multi_reduction <add>, %0, %cst [1] : vector<16x32xf32> to vector<16xf32>
    %2 = vector.shape_cast %1 : vector<16xf32> to vector<16x1xf32>
    %cst_1 = arith.constant 3.200000e+01 : f32
    %3 = vector.broadcast %cst_1 : f32 to vector<16x1xf32>
    %4 = arith.divf %2, %3 : vector<16x1xf32>
    %5 = vector.broadcast %4 : vector<16x1xf32> to vector<16x32xf32>
    %6 = arith.subf %0, %5 : vector<16x32xf32>
    %7 = arith.mulf %6, %6 : vector<16x32xf32>
    %cst_2 = arith.constant dense<0.000000e+00> : vector<16xf32>
    %8 = vector.multi_reduction <add>, %7, %cst_2 [1] : vector<16x32xf32> to vector<16xf32>
    %9 = vector.shape_cast %8 : vector<16xf32> to vector<16x1xf32>
    %cst_3 = arith.constant 3.200000e+01 : f32
    %10 = vector.broadcast %cst_3 : f32 to vector<16x1xf32>
    %11 = arith.divf %9, %10 : vector<16x1xf32>
    %12 = vector.broadcast %4 : vector<16x1xf32> to vector<16x32xf32>
    %13 = arith.subf %0, %12 : vector<16x32xf32>
    %cst_4 = arith.constant 9.99999996E-13 : f32
    %14 = vector.broadcast %cst_4 : f32 to vector<16x1xf32>
    %15 = arith.addf %11, %14 : vector<16x1xf32>
    %16 = math.rsqrt %15 : vector<16x1xf32>
    %17 = vector.broadcast %16 : vector<16x1xf32> to vector<16x32xf32>
    %18 = arith.mulf %13, %17 : vector<16x32xf32>
    %c0_5 = arith.constant 0 : index
    %c0_6 = arith.constant 0 : index
    %19 = vector.load %arg2[%c0_5, %c0_6] : memref<1x32xf32, #tpu.memory_space<vmem>>, vector<1x32xf32>
    %20 = vector.broadcast %19 : vector<1x32xf32> to vector<16x32xf32>
    %21 = arith.mulf %18, %20 : vector<16x32xf32>
    %c0_7 = arith.constant 0 : index
    %c0_8 = arith.constant 0 : index
    %22 = vector.load %arg3[%c0_7, %c0_8] : memref<1x32xf32, #tpu.memory_space<vmem>>, vector<1x32xf32>
    %23 = vector.broadcast %22 : vector<1x32xf32> to vector<16x32xf32>
    %24 = arith.addf %21, %23 : vector<16x32xf32>
    %25 = arith.truncf %24 : vector<16x32xf32> to vector<16x32xbf16>
    %c0_9 = arith.constant 0 : index
    %c0_10 = arith.constant 0 : index
    %26 = vector.load %arg4[%c0_9, %c0_10] : memref<16x32xbf16, #tpu.memory_space<vmem>>, vector<16x32xbf16>
    tpu.vector_store %arg4[%c0_9, %c0_10], %25 {strides = array<i32>} : memref<16x32xbf16, #tpu.memory_space<vmem>>, vector<16x32xbf16>,
    return
  }
  func.func @transform_0(%arg0: i32) -> (i32, i32) {
    %c0_i32 = arith.constant 0 : i32
    %c0_i32_0 = arith.constant 0 : i32
    return %arg0, %c0_i32 : i32, i32
  }
  func.func @transform_1(%arg0: i32) -> (i32, i32) {
    %c0_i32 = arith.constant 0 : i32
    %c0_i32_0 = arith.constant 0 : i32
    %c0_i32_1 = arith.constant 0 : i32
    return %c0_i32, %c0_i32_0 : i32, i32
  }
  func.func @transform_2(%arg0: i32) -> (i32, i32) {
    %c0_i32 = arith.constant 0 : i32
    %c0_i32_0 = arith.constant 0 : i32
    %c0_i32_1 = arith.constant 0 : i32
    return %c0_i32, %c0_i32_0 : i32, i32
  }
  func.func @transform_3(%arg0: i32) -> (i32, i32) {
    %c0_i32 = arith.constant 0 : i32
    %c0_i32_0 = arith.constant 0 : i32
    return %arg0, %c0_i32 : i32, i32
  }
}

</mosaic_0001>

<bundles_post_ra>
// kernel: tpu_custom_call.1
= control target key start
LH: loop header
LB: loop body
LE: loop exit
PB: predicated region body
PF: predicated region fallthrough
CT: control target
= control target key end

     0   :  { %8 = vsyncpa [#allocation3], 0  ;;  %s207_s0 = inlined_call_operand.hbm [shape: f32[16,32], index: 0, kind: input, shape index: {}]   ;;  %s208_s1 = inlined_call_operand.vmem [shape: f32[1,32], index: 1, kind: input, shape index: {}]   ;;  %s209_s2 = inlined_call_operand.vmem [shape: f32[1,32], index: 2, kind: input, shape index: {}]   ;;  %s210_s3 = inlined_call_operand.hbm [shape: bf16[16,32], index: 3, kind: output, shape index: {}]  }
   0x1   :  { %9 = vsyncpa [#allocation4], 0  ;;  %s165_s12 = smov [#allocation2]  }
   0x2   :  { %s15_s13 = sshll.u32 %s165_s12, 4  ;;  %s16_s13 = int_to_ptr.vmem [resolvable:$true] %s15_s13 }
   0x3   :  { %s129_s14 = scalar_lea.vmem %s16_s13, 256  ;;  %p134_p1 = scmp.lt.s32.totalorder %s16_s13, %s16_s13 }
   0x4   :  { %p130_p0 = scmp.ne.s32.totalorder %s16_s13, %s129_s14  ;;  %p135_p2 = scmp.lt.s32.totalorder %s129_s14, %s129_s14 }
   0x6   :  { %p136_p3 = por %p135_p2, %p134_p1 }
   0x8   :  { %p137_p4 = pnand %p136_p3, %p130_p0 }
   0xa   :  { %140 = shalt.err (!%p137_p4)
}
   0xb   :  { %s166_s15 = smov 128   ;;  %s167_s16 = smov 8  }
   0xc   :  { %21 = dma.hbm_to_vmem [thread:$0]  %s207_s0, 256, %s16_s13, [#allocation3], %s166_s15, %s166_s15, %s167_s16  }
   0xd   :  { %161 = dma.done.wait [#allocation3], 256  }
   0xe   :  { %162 = vsyncadd [#allocation3], 4294967040  ;;  %vm31_vm0 = vcmask 261120   ;;  %v29_v0 = vld [vmem:[#allocation2] sm:$0xff]  ;;  %v30_v1 = vld [vmem:[#allocation2 + $0x8] sm:$0xff]  ;;  %vm85_vm1 = vcmask 257024  }
   0xf   :  { %v32_v2 = vsel %vm31_vm0, %v29_v0, 0.0  ;;  %v35_v3 = vsel %vm31_vm0, %v30_v1, 0.0  ;;  %v105_v21 = vld [vmem:[%s208_s1] ss:$0 sm:$0xff]  ;;  %s168_s22 = smov [#allocation5]  }
  0x10   :  { %33 = vadd.xlane.f32.xlu0 %v32_v2  ;;  %v106_v23 = vld [vmem:[%s209_s2] ss:$0 sm:$0xff]  ;;  %s93_s23 = sshll.u32 %s168_s22, 4  ;;  %s94_s23 = int_to_ptr.vmem [resolvable:$true] %s93_s23 }
  0x11   :  { %s141_s1 = scalar_lea.vmem %s94_s23, 128  ;;  %p146_p6 = scmp.lt.s32.totalorder %s94_s23, %s94_s23 }
  0x12   :  { %p142_p5 = scmp.ne.s32.totalorder %s94_s23, %s141_s1  ;;  %p147_p7 = scmp.lt.s32.totalorder %s141_s1, %s141_s1 }
  0x14   :  { %36 = vadd.xlane.f32.xlu0 %v35_v3  ;;  %p148_p8 = por %p147_p7, %p146_p6 }
  0x16   :  { %p149_p9 = pnand %p148_p8, %p142_p5 }
  0x99   :  { %v34_v4 = vpop.xlane.xlu0 %33 }
  0x9a   :  { %v39_v5 = vmul.f32 0.03125, %v34_v4 }
  0x9c   :  { %v41_v6 = vsub.f32 %v29_v0, %v39_v5 }
  0x9d   :  { %v37_v7 = vpop.xlane.xlu0 %36 }
  0x9e   :  { %v40_v8 = vmul.f32 0.03125, %v37_v7  ;;  %v43_v9 = vmul.f32 %v41_v6, %v41_v6 }
  0xa0   :  { %v42_v10 = vsub.f32 %v30_v1, %v40_v8  ;;  %v45_v11 = vsel %vm31_vm0, %v43_v9, 0.0 }
  0xa1   :  { %46 = vadd.xlane.f32.xlu1 %v45_v11 }
  0xa2   :  { %v44_v12 = vmul.f32 %v42_v10, %v42_v10 }
  0xa4   :  { %v48_v13 = vsel %vm31_vm0, %v44_v12, 0.0 }
  0xa5   :  { %49 = vadd.xlane.f32.xlu1 %v48_v13 }
 0x12a   :  { %v47_v14 = vpop.xlane.xlu1 %46 }
 0x12b   :  { %v51_v15 = vmul.f32 0.03125, %v47_v14 }
 0x12d   :  { %v53_v16 = vadd.f32 1e-12, %v51_v15 }
 0x12e   :  { %v50_v17 = vpop.xlane.xlu1 %49 }
 0x12f   :  { %117 = vrsqrt.f32 %v53_v16  ;;  %v52_v18 = vmul.f32 0.03125, %v50_v17 }
 0x131   :  { %v54_v19 = vadd.f32 1e-12, %v52_v18 }
 0x133   :  { %119 = vrsqrt.f32 %v54_v19 }
 0x13c   :  { %v118_v20 = vpop.eup %117 }
 0x13d   :  { %v57_v22 = vmul.f32 %v118_v20, %v41_v6 }
 0x13f   :  { %v66_v24 = vmul.f32 %v105_v21, %v57_v22 }
 0x140   :  { %v120_v25 = vpop.eup %119 }
 0x141   :  { %v58_v26 = vmul.f32 %v120_v25, %v42_v10  ;;  %v75_v27 = vadd.f32 %v106_v23, %v66_v24 }
 0x143   :  { %v67_v28 = vmul.f32 %v105_v21, %v58_v26  ;;  %v109_v29 = vpack.c.bf16 %v75_v27, %v75_v27 }
 0x145   :  { %v76_v30 = vadd.f32 %v106_v23, %v67_v28  ;;  %86 = vst.msk [vmem:[#allocation5] sm:$0xf] %vm85_vm1, %v109_v29 }
 0x147   :  { %v110_v31 = vpack.c.bf16 %v76_v30, %v76_v30 }
 0x149   :  { %87 = vst.msk [vmem:[#allocation5 + $0x4] sm:$0xf] %vm85_vm1, %v110_v31 }
 0x14a   :  { %152 = shalt.err (!%p149_p9)
}
 0x14b   :  { %s169_s2 = smov 64   ;;  %s170_s24 = smov 4  }
 0x14c   :  { %99 = dma.vmem_to_hbm [thread:$0]  %s94_s23, 128, %s210_s3, [#allocation4], %s169_s2, %s169_s2, %s170_s24  }
 0x14d   :  { %163 = dma.done.wait [#allocation4], 128  }
 0x14e   :  { %164 = vsyncadd [#allocation4], 4294967168 }
 0x14f   :  { %103 = vsyncpa [#allocation3], 1 }
 0x150   :  { %104 = vsyncpa [#allocation4], 1 }

</bundles_post_ra>
